<compile_context>
chip_gen: v6e
topology: v6e:2x2x1
jax: 0.10.0
libtpu: 0.0.40
codegen_flags: <defaults>
</compile_context>

<pallas_src>
import jax
import jax.numpy as jnp
from jax.experimental import pallas as pl
from jax.experimental.pallas import tpu as pltpu


def xornet_kernel(params_ref, x_ref, o_ref):
    # params_ref: SMEM (9,) f32 = [w1_00, w1_01, w1_10, w1_11, b1_0, b1_1,
    #                              w2_0, w2_1, b2]
    # x_ref:      VMEM (2, TN)  — features on sublanes, batch on lanes.
    # o_ref:      VMEM (1, TN)  — lane-dense output row.
    x = x_ref[...]                      # (2, TN), single full-tile load
    x0 = x[0:1, :]                      # (1, TN) feature 0 over the batch
    x1 = x[1:2, :]                      # (1, TN) feature 1 over the batch

    # Scalar weights (read once per tile from SMEM; broadcast by the VPU).
    w1_00 = params_ref[0]
    w1_01 = params_ref[1]
    w1_10 = params_ref[2]
    w1_11 = params_ref[3]
    b1_0 = params_ref[4]
    b1_1 = params_ref[5]
    w2_0 = params_ref[6]
    w2_1 = params_ref[7]
    b2_0 = params_ref[8]

    # hidden = relu(x @ W1 + b1)  — two fused scalar*vector FMAs per unit.
    h0 = jnp.maximum(x0 * w1_00 + x1 * w1_10 + b1_0, 0.0)
    h1 = jnp.maximum(x0 * w1_01 + x1 * w1_11 + b1_1, 0.0)

    # out = hidden @ W2 + b2  — full-width unmasked store.
    o_ref[...] = h0 * w2_0 + h1 * w2_1 + b2_0


def xornet_forward(x, w1, b1, w2, b2, *, tn_max=64 * 1024):
    """x: (N, 2) f32; w1: (2, 2); b1: (2,); w2: (2, 1); b2: (1,). Returns (N, 1)."""
    n = x.shape[0]

    # Pack all 9 parameters into one SMEM-resident f32 vector.
    params = jnp.concatenate(
        [w1.reshape(-1), b1.reshape(-1), w2.reshape(-1), b2.reshape(-1)]
    ).astype(jnp.float32)  # (9,)

    # Lane-dense, 128-aligned batch tiling.  TN is a multiple of 128; the
    # double-buffered VMEM footprint is 2 * (2 + 1) * TN * 4 B, which at the
    # 64K cap is ~1.5 MiB — comfortably inside v7x's 64 MiB VMEM.
    n128 = ((n + 127) // 128) * 128
    tn = min(tn_max, n128)
    n_pad = ((n + tn - 1) // tn) * tn
    num_tiles = n_pad // tn

    # (N, 2) -> (2, N_pad): batch on lanes, zero-padded tail (sliced off below).
    xt = jnp.zeros((2, n_pad), jnp.float32).at[:, :n].set(
        x.astype(jnp.float32).T
    )

    out = pl.pallas_call(
        xornet_kernel,
        out_shape=jax.ShapeDtypeStruct((1, n_pad), jnp.float32),
        grid=(num_tiles,),
        in_specs=[
            pl.BlockSpec(memory_space=pltpu.MemorySpace.SMEM),   # params (9,)
            pl.BlockSpec((2, tn), lambda i: (0, i)),             # x tile
        ],
        out_specs=pl.BlockSpec((1, tn), lambda i: (0, i)),       # out tile
        compiler_params=pltpu.CompilerParams(
            dimension_semantics=("parallel",),
        ),
    )(params, xt)

    return out[0, :n].reshape(n, 1)


def reference_forward(x, w1, b1, w2, b2):
    h = jnp.maximum(x @ w1 + b1, 0.0)
    return h @ w2 + b2


if __name__ == "__main__":
    key = jax.random.PRNGKey(0)
    k_x, k_w1, k_b1, k_w2, k_b2 = jax.random.split(key, 5)

    # Small batch of (n, 2) inputs, consistent with the module's forward.
    # n is intentionally not a multiple of 128 and tn_max is set small so the
    # run exercises padding + a multi-step (3-tile) grid.
    n = 300
    x = jax.random.normal(k_x, (n, 2), dtype=jnp.float32)

    # Deterministic parameters (shapes from nn.Linear(2,2) / nn.Linear(2,1),
    # stored transposed: (in, out)).
    w1 = jax.random.normal(k_w1, (2, 2), dtype=jnp.float32) * 0.5
    b1 = jax.random.normal(k_b1, (2,), dtype=jnp.float32) * 0.1
    w2 = jax.random.normal(k_w2, (2, 1), dtype=jnp.float32) * 0.5
    b2 = jax.random.normal(k_b2, (1,), dtype=jnp.float32) * 0.1

    out = xornet_forward(x, w1, b1, w2, b2, tn_max=128)
    out = jax.block_until_ready(out)

    ref = reference_forward(x, w1, b1, w2, b2)
    assert out.shape == (n, 1), out.shape
    assert jnp.allclose(out, ref, atol=1e-5, rtol=1e-5), (out, ref)

    print("KERNEL_OK")
</pallas_src>

<mosaic_0001>
module attributes {stable_mosaic.version = 11 : i64} {
  func.func @xornet_kernel(%arg0: i32, %arg1: memref<9xf32, #tpu.memory_space<smem>>, %arg2: memref<2x128xf32, #tpu.memory_space<vmem>>, %arg3: memref<1x128xf32, #tpu.memory_space<vmem>>) attributes {dimension_semantics = [#tpu.dimension_semantics<parallel>], iteration_bounds = array<i64: 3>, scalar_prefetch = 0 : i64, scratch_operands = 0 : i64, tpu.core_type = #tpu.core_type<tc>, window_params = [{transform_indices = @transform_0, window_bounds = array<i64: 9>}, {transform_indices = @transform_1, window_bounds = array<i64: 2, 128>}, {transform_indices = @transform_2, window_bounds = array<i64: 1, 128>}]} {
    %c0 = arith.constant 0 : index
    %c0_0 = arith.constant 0 : index
    %0 = vector.load %arg2[%c0, %c0_0] : memref<2x128xf32, #tpu.memory_space<vmem>>, vector<2x128xf32>
    %1 = vector.extract_strided_slice %0 {offsets = [0, 0], sizes = [1, 128], strides = [1, 1]} : vector<2x128xf32> to vector<1x128xf32>
    %2 = vector.extract_strided_slice %0 {offsets = [1, 0], sizes = [1, 128], strides = [1, 1]} : vector<2x128xf32> to vector<1x128xf32>
    %c0_1 = arith.constant 0 : index
    %3 = memref.load %arg1[%c0_1] : memref<9xf32, #tpu.memory_space<smem>>
    %c1 = arith.constant 1 : index
    %4 = memref.load %arg1[%c1] : memref<9xf32, #tpu.memory_space<smem>>
    %c2 = arith.constant 2 : index
    %5 = memref.load %arg1[%c2] : memref<9xf32, #tpu.memory_space<smem>>
    %c3 = arith.constant 3 : index
    %6 = memref.load %arg1[%c3] : memref<9xf32, #tpu.memory_space<smem>>
    %c4 = arith.constant 4 : index
    %7 = memref.load %arg1[%c4] : memref<9xf32, #tpu.memory_space<smem>>
    %c5 = arith.constant 5 : index
    %8 = memref.load %arg1[%c5] : memref<9xf32, #tpu.memory_space<smem>>
    %c6 = arith.constant 6 : index
    %9 = memref.load %arg1[%c6] : memref<9xf32, #tpu.memory_space<smem>>
    %c7 = arith.constant 7 : index
    %10 = memref.load %arg1[%c7] : memref<9xf32, #tpu.memory_space<smem>>
    %c8 = arith.constant 8 : index
    %11 = memref.load %arg1[%c8] : memref<9xf32, #tpu.memory_space<smem>>
    %12 = vector.broadcast %3 : f32 to vector<1x128xf32>
    %13 = arith.mulf %1, %12 : vector<1x128xf32>
    %14 = vector.broadcast %5 : f32 to vector<1x128xf32>
    %15 = arith.mulf %2, %14 : vector<1x128xf32>
    %16 = arith.addf %13, %15 : vector<1x128xf32>
    %17 = vector.broadcast %7 : f32 to vector<1x128xf32>
    %18 = arith.addf %16, %17 : vector<1x128xf32>
    %cst = arith.constant 0.000000e+00 : f32
    %19 = vector.broadcast %cst : f32 to vector<1x128xf32>
    %20 = arith.maximumf %18, %19 : vector<1x128xf32>
    %21 = vector.broadcast %4 : f32 to vector<1x128xf32>
    %22 = arith.mulf %1, %21 : vector<1x128xf32>
    %23 = vector.broadcast %6 : f32 to vector<1x128xf32>
    %24 = arith.mulf %2, %23 : vector<1x128xf32>
    %25 = arith.addf %22, %24 : vector<1x128xf32>
    %26 = vector.broadcast %8 : f32 to vector<1x128xf32>
    %27 = arith.addf %25, %26 : vector<1x128xf32>
    %cst_2 = arith.constant 0.000000e+00 : f32
    %28 = vector.broadcast %cst_2 : f32 to vector<1x128xf32>
    %29 = arith.maximumf %27, %28 : vector<1x128xf32>
    %30 = vector.broadcast %9 : f32 to vector<1x128xf32>
    %31 = arith.mulf %20, %30 : vector<1x128xf32>
    %32 = vector.broadcast %10 : f32 to vector<1x128xf32>
    %33 = arith.mulf %29, %32 : vector<1x128xf32>
    %34 = arith.addf %31, %33 : vector<1x128xf32>
    %35 = vector.broadcast %11 : f32 to vector<1x128xf32>
    %36 = arith.addf %34, %35 : vector<1x128xf32>
    %c0_3 = arith.constant 0 : index
    %c0_4 = arith.constant 0 : index
    %37 = vector.load %arg3[%c0_3, %c0_4] : memref<1x128xf32, #tpu.memory_space<vmem>>, vector<1x128xf32>
    tpu.vector_store %arg3[%c0_3, %c0_4], %36 {strides = array<i32>} : memref<1x128xf32, #tpu.memory_space<vmem>>, vector<1x128xf32>,
    return
  }
  func.func @transform_0(%arg0: i32) -> i32 {
    %c0_i32 = arith.constant 0 : i32
    %c0_i32_0 = arith.constant 0 : i32
    return %c0_i32 : i32
  }
  func.func @transform_1(%arg0: i32) -> (i32, i32) {
    %c0_i32 = arith.constant 0 : i32
    %c0_i32_0 = arith.constant 0 : i32
    return %c0_i32, %arg0 : i32, i32
  }
  func.func @transform_2(%arg0: i32) -> (i32, i32) {
    %c0_i32 = arith.constant 0 : i32
    %c0_i32_0 = arith.constant 0 : i32
    return %c0_i32, %arg0 : i32, i32
  }
}

</mosaic_0001>

<bundles_post_ra>
// kernel: tpu_custom_call.1
= control target key start
LH: loop header
LB: loop body
LE: loop exit
PB: predicated region body
PF: predicated region fallthrough
CT: control target
= control target key end

     0   :  { %7 = vsyncpa [#allocation5], 0  ;;  %s656_s0 = inlined_call_operand.hbm [shape: f32[9], index: 0, kind: input, shape index: {}]   ;;  %s657_s1 = inlined_call_operand.hbm [shape: f32[2,384], index: 1, kind: input, shape index: {}]   ;;  %s658_s2 = inlined_call_operand.hbm [shape: f32[1,384], index: 2, kind: output, shape index: {}]  }
   0x1   :  { %8 = vsyncpa [#allocation3], 0 }
   0x2   :  { %10 = vsyncpa [#allocation3 + $0x1], 0 }
   0x3   :  { %11 = vsyncpa [#allocation4], 0 }
   0x4   :  { %13 = vsyncpa [#allocation4 + $0x1], 0  ;;  %s505_s9 = smov 0   ;;  %s507_s10 = smov 0  }
   0x5   :  { %s509_s11 = smov 0   ;;  %s511_s12 = smov 0  }
   0x6 LB: > { %s526_s13 = sadd.s32 4294967295, %s485_s12   ;;  %s301_s14 = sadd.s32 4294967294, %s485_s12   ;;  %s485_s12 = sphi %s511_s12, %s677_s12   ;;  %s481_s11 = sphi %s509_s11, %s676_s11   ;;  %s477_s10 = sphi %s507_s10, %s675_s10   ;;  %s473_s9 = sphi %s505_s9, %s674_s9  }
   0x7   : > { %p60_p0 = scmp.ne.s32.totalorder %s477_s10, %s473_s9  ;;  %p659_p1 = scmp.eq.s32.totalorder %s526_s13, 0 }
   0x8   : > { %p84_p2 = scmp.eq.s32.totalorder %s526_s13, 2  ;;  %p90_p3 = scmp.eq.s32.totalorder %s301_s14, 2 }
   0x9   : > { %p535_p4 = por %p659_p1, %p60_p0  ;;  %p302_p5 = scmp.ge.s32.totalorder %s485_s12, 1 }
   0xa   : > { %p540_p6 = por %p90_p3, %p60_p0  ;;  %p97_p7 = scmp.lt.s32.totalorder %s485_s12, 4 }
   0xb   : > { %s663_s15 = scalar_select %p535_p4, 1, 0 }
   0xc   : > { %s664_s16 = scalar_select %p540_p6, 1, 0 }
   0xd   : > { %p545_p8 = pnand %p302_p5, %p97_p7  ;;  %s550_s18 = sadd.s32 1, %s485_s12  }
   0xe   : > { %s44_s19 = ssub.s32 %s485_s12, %s550_s18  ;;  %s47_s20 = sadd.s32 1, %s481_s11 }
   0xf   : > { %s665_s17 = scalar_select %p545_p8, 1, 0 }
  0x10   : > { %p329_p9 = pneg %p545_p8  ;;  %p45_p11 = scmp.eq.s32.totalorder %s44_s19, 0 }
  0x11   : > { %p54_p12 = scmp.ne.s32.totalorder %s481_s11, %s477_s10  ;;  %p55_p13 = scmp.eq.s32.totalorder %s485_s12, 0 }
  0x12   : > { %p330_p10 = pnand %p329_p9, %p659_p1  ;;  %p342_p0 = scmp.lt.s32.totalorder %s485_s12, 3 }
  0x13   : > { %s487_s21 = smov [#allocation2]   ;;  %p56_p3 = por %p55_p13, %p54_p12 }
  0x14   : > { %332 = dma.hbm_to_smem (!%p330_p10), %s656_s0, 16, %s487_s21, [#allocation5]  }
  0x15   : > { %s567_s24 = scalar_select %p45_p11, %s481_s11, %s47_s20  }
  0x16   : > { %p571_p5 = por %p84_p2, %p54_p12  ;;  %s119_s26 = sand.u32 1, %s481_s11  }
  0x17   : > { %s306_s27 = sshll.u32 %s485_s12, 5  ;;  %s305_s28 = sshll.u32 %s119_s26, 1 }
  0x18   : > { %s666_s25 = scalar_select %p571_p5, 1, 0 }
  0x19   : > { %s580_s3 = scalar_lea.hbm %s657_s1, %s306_s27  ;;  %s123_s4 = scalar_lea.vmem [#allocation6], %s305_s28 }
  0x1a   : > { %s130_s5 = sshll.u32 %s123_s4, 4  ;;  %p582_p7 = pnand %p342_p0, %p56_p3  ;;  %s131_s5 = int_to_ptr.vmem [resolvable:$true] %s130_s5 }
  0x1b   : > { %s120_s7 = scalar_lea.sflag [#allocation3], %s119_s26  ;;  %s389_s8 = scalar_lea.hbm %s580_s3, 32 }
  0x1c   : > { %p390_p2 = scmp.ne.s32.totalorder %s580_s3, %s389_s8  ;;  %p391_p9 = pneg %p582_p7 }
  0x1d   : > { %s394_s20 = scalar_lea.hbm %s657_s1, 96  ;;  %p395_p12 = scmp.lt.s32.totalorder %s580_s3, %s657_s1 }
  0x1e   : > { %p392_p10 = pnand %p391_p9, %p390_p2  ;;  %p396_p13 = scmp.lt.s32.totalorder %s394_s20, %s389_s8 }
  0x20   : > { %p393_p11 = pneg %p392_p10  ;;  %p397_p0 = por %p396_p13, %p395_p12 }
  0x22   : > { %p398_p3 = pnand %p397_p0, %p393_p11 }
  0x24   : > { %401 = shalt.err (!%p398_p3)
}
  0x25   : > { %s402_s23 = scalar_lea.vmem %s131_s5, 32  ;;  %s488_s26 = smov [#allocation6]  }
  0x26   : > { %p403_p1 = scmp.ne.s32.totalorder %s131_s5, %s402_s23  ;;  %s407_s27 = sshll.u32 %s488_s26, 4  ;;  %s408_s27 = int_to_ptr.vmem [resolvable:$false] %s407_s27 }
  0x27   : > { %s409_s28 = scalar_lea.vmem %s408_s27, 64  ;;  %p410_p2 = scmp.lt.s32.totalorder %s131_s5, %s408_s27 }
  0x28   : > { %p405_p6 = pnand %p403_p1, %p391_p9  ;;  %p411_p10 = scmp.lt.s32.totalorder %s409_s28, %s402_s23 }
  0x2a   : > { %p406_p5 = pneg %p405_p6  ;;  %p412_p4 = por %p411_p10, %p410_p2 }
  0x2c   : > { %p413_p8 = pnand %p412_p4, %p406_p5 }
  0x2e   : > { %416 = shalt.err (!%p413_p8)
}
  0x2f   : > { %336 = dma.hbm_to_vmem [thread:$0]  (!%p582_p7), %s580_s3, 32, %s131_s5, %s120_s7  }
  0x30   : > { %p668_p11 = scmp.ne.s32.totalorder %s665_s17, 0 }
  0x31   : > { %p669_p12 = scmp.eq.s32.totalorder (!%p668_p11), %s526_s13, 0 }
  0x32   : > { %139 = sbr.rel (%p668_p11) target bundleno = 101 (0x65), region = 28 }
  0x37   : > { %460 = dma.done.wait (%p669_p12), [#allocation5], 16   ;;  %p670_p1 = pmov %p669_p12 }
  0x38   : > { %s607_s29 = sand.u32 1, %s477_s10   ;;  %p671_p4 = scmp.ne.s32.totalorder %s663_s15, 0 }
  0x39   : > { %462 = vsyncadd (%p670_p1), [#allocation5], 4294967280  ;;  %s309_s30 = sshll.u32 %s607_s29, 1  ;;  %s146_s4 = scalar_lea.sflag [#allocation3], %s607_s29 }
  0x3a   : > { %s149_s6 = scalar_lea.vmem [#allocation6], %s309_s30 }
  0x3b   : > { %464 = dma.done.wait (%p671_p4), %s146_s4, 32  }
  0x3c   : > { %466 = vsyncadd (%p671_p4), %s146_s4, 4294967264 }
  0x3d   : > { %154 = sfence }
  0x3e   : > { %s171_s17 = sld [smem:[#allocation2]]  ;;  %v170_v0 = vld [vmem:[%s149_s6] sm:$0x3]  ;;  %s169_s21 = scalar_lea.vmem [#allocation7], %s607_s29 }
  0x3f   : > { %s310_s3 = sld [smem:[#allocation2 + $0x1]]  ;;  %s223_s22 = sshll.u32 %s169_s21, 4  ;;  %s617_s22 = int_to_ptr.vmem [resolvable:$true] %s223_s22 }
  0x40   : > { %s311_s5 = sld [smem:[#allocation2 + $0x2]]  ;;  %s318_s23 = sshll.u32 %s526_s13, 4 }
  0x41   : > { %s312_s7 = sld [smem:[#allocation2 + $0x3]]  ;;  %s221_s28 = scalar_lea.hbm %s658_s2, %s318_s23 }
  0x42   : > { %s313_s8 = sld [smem:[#allocation2 + $0x4]]  ;;  %s211_s30 = scalar_lea.sflag [#allocation4], %s607_s29 }
  0x43   : > { %s314_s14 = sld [smem:[#allocation2 + $0x5]]  ;;  %s417_s4 = scalar_lea.vmem %s617_s22, 16 }
  0x44   : > { %v180_v1 = vstv %s171_s17  ;;  %s315_s19 = sld [smem:[#allocation2 + $0x6]]  ;;  %p418_p6 = scmp.ne.s32.totalorder %s617_s22, %s417_s4 }
  0x45   : > { %v191_v2 = vstv %s310_s3  ;;  %s316_s20 = sld [smem:[#allocation2 + $0x7]]  ;;  %v181_v4 = vmul.f32 %v180_v1, %v170_v0  ;;  %p672_p8 = scmp.ne.s32.totalorder %s666_s25, 0 }
  0x46   : > { %v182_v3 = vstv %s311_s5  ;;  %v192_v7 = vmul.f32 %v191_v2, %v170_v0  ;;  %s317_s15 = sld [smem:[#allocation2 + $0x8]]  ;;  %s489_s6 = smov [#allocation7]  }
  0x47   : > { %v183_v5 = vmul.f32 %v182_v3, %v170_v0  ;;  %v193_v6 = vstv %s312_s7  ;;  %p419_p5 = pnand %p418_p6, %p672_p8  ;;  %s421_s13 = sshll.u32 %s489_s6, 4  ;;  %s422_s13 = int_to_ptr.vmem [resolvable:$false] %s421_s13 }
  0x48   : > { %v194_v8 = vmul.f32 %v193_v6, %v170_v0  ;;  %v188_v10 = vstv %s313_s8  ;;  %s423_s17 = scalar_lea.vmem %s422_s13, 32  ;;  %p424_p9 = scmp.lt.s32.totalorder %s617_s22, %s422_s13 }
  0x49   : > { %v185_v9 = vrot.slane %v183_v5, 1  ;;  %v199_v13 = vstv %s314_s14  ;;  %p420_p7 = pneg %p419_p5  ;;  %p425_p13 = scmp.lt.s32.totalorder %s423_s17, %s417_s4 }
  0x4a   : > { %v196_v11 = vrot.slane %v194_v8, 1  ;;  %v202_v17 = vstv %s315_s19 }
  0x4b   : > { %v187_v12 = vadd.f32 %v185_v9, %v181_v4  ;;  %v204_v19 = vstv %s316_s20  ;;  %p426_p0 = por %p425_p13, %p424_p9 }
  0x4c   : > { %v198_v14 = vadd.f32 %v196_v11, %v192_v7  ;;  %v207_v23 = vstv %s317_s15 }
  0x4d   : > { %v189_v15 = vadd.f32 %v188_v10, %v187_v12  ;;  %p427_p3 = pnand %p426_p0, %p420_p7 }
  0x4e   : > { %v200_v16 = vadd.f32 %v199_v13, %v198_v14 }
  0x4f   : > { %v190_v18 = vmax.f32 %v189_v15, 0.0 }
  0x50   : > { %v201_v20 = vmax.f32 %v200_v16, 0.0 }
  0x51   : > { %v203_v21 = vmul.f32 %v202_v17, %v190_v18 }
  0x52   : > { %v205_v22 = vmul.f32 %v204_v19, %v201_v20 }
  0x54   : > { %v206_v24 = vadd.f32 %v205_v22, %v203_v21 }
  0x56   : > { %v208_v25 = vadd.f32 %v207_v23, %v206_v24 }
  0x58   : > { %209 = vst [vmem:[%s169_s21] sm:$0x1] %v208_v25 }
  0x59   : > { %430 = shalt.err (!%p427_p3)
}
  0x5a   : > { %s431_s3 = scalar_lea.hbm %s221_s28, 16  ;;  %s435_s7 = scalar_lea.hbm %s658_s2, 48 }
  0x5b   : > { %p432_p2 = scmp.ne.s32.totalorder %s221_s28, %s431_s3  ;;  %p436_p12 = scmp.lt.s32.totalorder %s221_s28, %s658_s2 }
  0x5c   : > { %p437_p1 = scmp.lt.s32.totalorder %s435_s7, %s431_s3 }
  0x5d   : > { %p433_p10 = pnand %p432_p2, %p672_p8 }
  0x5e   : > { %p438_p4 = por %p437_p1, %p436_p12 }
  0x5f   : > { %p434_p11 = pneg %p433_p10 }
  0x61   : > { %p439_p6 = pnand %p438_p4, %p434_p11 }
  0x63   : > { %442 = shalt.err (!%p439_p6)
}
  0x64   : > { %327 = dma.vmem_to_hbm [thread:$0]  (%p672_p8), %s617_s22, 16, %s221_s28, %s211_s30  }
  0x65 PF: > { %p344_p5 = scmp.ge.s32.totalorder %s485_s12, 2  ;;  %s235_s19 = sand.u32 1, %s473_s9  }
  0x66   : > { %p673_p7 = scmp.ne.s32.totalorder %s664_s16, 0  ;;  %s236_s20 = scalar_lea.sflag [#allocation4], %s235_s19 }
  0x68   : > { %p338_p9 = pnand %p344_p5, %p673_p7 }
  0x6a   : > { %p339_p13 = pneg %p338_p9 }
  0x6c   : > { %468 = dma.done.wait (%p339_p13), %s236_s20, 16  }
  0x6d   : > { %470 = vsyncadd (%p339_p13), %s236_s20, 4294967280  ;;  %p16_p0 = scmp.ge.s32.totalorder %s550_s18, 5   ;;  %s674_s9 = smov %s477_s10 }
  0x6e   : > { %s675_s10 = smov %s481_s11  ;;  %s676_s11 = smov %s567_s24 }
  0x6f   : > { %s677_s12 = smov %s550_s18  ;;  %18 = sbr.rel (!%p16_p0) target bundleno = 6 (0x6), region = 78 }
  0x74   :  { %240 = vsyncpa [#allocation3], 1 }
  0x75   :  { %242 = vsyncpa [#allocation3 + $0x1], 1 }
  0x76   :  { %243 = vsyncpa [#allocation4], 1 }
  0x77   :  { %245 = vsyncpa [#allocation4 + $0x1], 1 }
  0x78   :  { %246 = vsyncpa [#allocation5], 1 }
  0x79   :  { %248 = vsyncpa [#allocation5 + $0x1], 1 }

</bundles_post_ra>
